<compile_context>
chip_gen: v7x
topology: tpu7x:2x2x1
jax: 0.10.0
libtpu: 0.0.40
codegen_flags: <defaults>
</compile_context>

<pallas_src>
import jax
import jax.numpy as jnp
from jax.experimental import pallas as pl
from jax.experimental.pallas import tpu as pltpu

LANE = 128


def _round_up(n, m):
    return ((n + m - 1) // m) * m


def mlp_kernel(x_ref, w1_ref, b1_ref, w2_ref, b2_ref, w3_ref, b3_ref, o_ref):
    cd = w1_ref.dtype  # compute dtype for MXU operands (bf16 or f32)

    # Layer 1: tanh(x @ W1 + b1)   (f32 accumulation, f32 activations)
    h1 = jnp.tanh(
        jnp.dot(x_ref[...], w1_ref[...], preferred_element_type=jnp.float32)
        + b1_ref[...]
    )
    # Layer 2: sigmoid(h1 @ W2 + b2)
    h2 = jax.nn.sigmoid(
        jnp.dot(h1.astype(cd), w2_ref[...], preferred_element_type=jnp.float32)
        + b2_ref[...]
    )
    # Layer 3: h2 @ W3 + b3  (no activation; W3/b3 are lane-padded to 128 cols)
    out = (
        jnp.dot(h2.astype(cd), w3_ref[...], preferred_element_type=jnp.float32)
        + b3_ref[...]
    )
    o_ref[...] = out.astype(o_ref.dtype)  # full-lane (unmasked) store


def nn_mpc_forward(x, params, *, tb=1024, compute_dtype=jnp.bfloat16):
    """Fused forward pass of NN_MPC.

    x: [B, input_dim] float32.
    params: (w1, b1, w2, b2, w3, b3) with W as [in, out] and b as [1, out].
    """
    w1, b1, w2, b2, w3, b3 = params
    B, d_in = x.shape
    h1d = w1.shape[1]
    h2d = w2.shape[1]
    d_out = w3.shape[1]

    # --- lane-dense output: pad last layer to a multiple of 128 columns -----
    n3 = _round_up(d_out, LANE)
    w3p = jnp.zeros((h2d, n3), jnp.float32).at[:, :d_out].set(w3)
    b3p = jnp.zeros((1, n3), jnp.float32).at[:, :d_out].set(b3)

    # --- MXU operand dtype (weights + activations); biases/acc stay f32 -----
    xc = x.astype(compute_dtype)
    w1c = w1.astype(compute_dtype)
    w2c = w2.astype(compute_dtype)
    w3c = w3p.astype(compute_dtype)

    # --- batch tiling: big tiles, no partial blocks ---------------------------
    tb_eff = max(8, min(_round_up(tb, 8), _round_up(B, 8)))
    Bp = _round_up(B, tb_eff)
    if Bp != B:
        xc = jnp.pad(xc, ((0, Bp - B), (0, 0)))  # pad rows are computed, then dropped
    grid = (Bp // tb_eff,)

    # Weights/biases: full-array blocks with a constant index_map -> fetched
    # once by the pipeliner (no per-step re-DMA).
    full = lambda a: pl.BlockSpec(a.shape, lambda i: (0,) * a.ndim)

    itemsize = jnp.dtype(compute_dtype).itemsize
    flops = 2 * Bp * (d_in * h1d + h1d * h2d + h2d * n3)
    transcendentals = Bp * (h1d + h2d)  # tanh + sigmoid(exp)
    bytes_accessed = (
        Bp * d_in * itemsize                              # x
        + Bp * n3 * 4                                     # output
        + (d_in * h1d + h1d * h2d + h2d * n3) * itemsize  # weights
        + (h1d + h2d + n3) * 4                            # biases
    )

    out_padded = pl.pallas_call(
        mlp_kernel,
        out_shape=jax.ShapeDtypeStruct((Bp, n3), jnp.float32),
        grid_spec=pl.GridSpec(
            grid=grid,
            in_specs=[
                pl.BlockSpec((tb_eff, d_in), lambda i: (i, 0)),
                full(w1c), full(b1),
                full(w2c), full(b2),
                full(w3c), full(b3p),
            ],
            out_specs=pl.BlockSpec((tb_eff, n3), lambda i: (i, 0)),
        ),
        compiler_params=pltpu.CompilerParams(
            dimension_semantics=("parallel",),
        ),
        cost_estimate=pl.CostEstimate(
            flops=flops,
            transcendentals=transcendentals,
            bytes_accessed=bytes_accessed,
        ),
    )(xc, w1c, b1, w2c, b2, w3c, b3p)

    return out_padded[:B, :d_out]


def init_params(key, d_in, h1, h2, h3):
    """Deterministic init mimicking nn.Linear (uniform +/- 1/sqrt(fan_in))."""
    ks = jax.random.split(key, 6)

    def linear(kw, kb, fan_in, fan_out):
        bound = 1.0 / jnp.sqrt(float(fan_in))
        w = jax.random.uniform(kw, (fan_in, fan_out), jnp.float32, -bound, bound)
        b = jax.random.uniform(kb, (1, fan_out), jnp.float32, -bound, bound)
        return w, b

    w1, b1 = linear(ks[0], ks[1], d_in, h1)
    w2, b2 = linear(ks[2], ks[3], h1, h2)
    w3, b3 = linear(ks[4], ks[5], h2, h3)
    return (w1, b1, w2, b2, w3, b3)


def nn_mpc_reference(x, params):
    """Pure-JAX f32 reference for correctness checking."""
    w1, b1, w2, b2, w3, b3 = params
    h = jnp.tanh(x @ w1 + b1)
    h = jax.nn.sigmoid(h @ w2 + b2)
    return h @ w3 + b3


if __name__ == "__main__":
    # config = {'input_dim': 16, 'hidden1': 32, 'hidden2': 32, 'hidden3': 8, ...}
    B, d_in, h1, h2, d_out = 512, 16, 32, 32, 8

    key = jax.random.PRNGKey(0)
    kx, kp = jax.random.split(key)
    x = jax.random.normal(kx, (B, d_in), dtype=jnp.float32)
    params = init_params(kp, d_in, h1, h2, d_out)

    ref = nn_mpc_reference(x, params)

    # f32 MXU path, 2 grid steps (tb=256): tight tolerance.
    out_f32 = jax.block_until_ready(
        nn_mpc_forward(x, params, tb=256, compute_dtype=jnp.float32)
    )
    assert out_f32.shape == (B, d_out), out_f32.shape
    assert jnp.allclose(out_f32, ref, atol=1e-5, rtol=1e-5), "f32 mismatch vs reference"

    # Default bf16-operand path (f32 accumulation): loose tolerance.
    out_bf16 = jax.block_until_ready(nn_mpc_forward(x, params, tb=256))
    assert out_bf16.shape == (B, d_out), out_bf16.shape
    assert jnp.allclose(out_bf16, ref, atol=3e-2, rtol=3e-2), "bf16 mismatch vs reference"

    # Ragged batch (not a multiple of 8/tb): exercises row padding + slicing.
    out_small = jax.block_until_ready(
        nn_mpc_forward(x[:37], params, compute_dtype=jnp.float32)
    )
    assert out_small.shape == (37, d_out), out_small.shape
    assert jnp.allclose(out_small, ref[:37], atol=1e-5, rtol=1e-5), "ragged mismatch"

    print("KERNEL_OK")
</pallas_src>

<mosaic_0001>
module attributes {stable_mosaic.version = 11 : i64} {
  func.func @mlp_kernel(%arg0: i32, %arg1: memref<256x16xf32, #tpu.memory_space<vmem>>, %arg2: memref<16x32xf32, #tpu.memory_space<vmem>>, %arg3: memref<1x32xf32, #tpu.memory_space<vmem>>, %arg4: memref<32x32xf32, #tpu.memory_space<vmem>>, %arg5: memref<1x32xf32, #tpu.memory_space<vmem>>, %arg6: memref<32x128xf32, #tpu.memory_space<vmem>>, %arg7: memref<1x128xf32, #tpu.memory_space<vmem>>, %arg8: memref<256x128xf32, #tpu.memory_space<vmem>>) attributes {dimension_semantics = [#tpu.dimension_semantics<parallel>], iteration_bounds = array<i64: 2>, scalar_prefetch = 0 : i64, scratch_operands = 0 : i64, tpu.core_type = #tpu.core_type<tc>, window_params = [{transform_indices = @transform_0, window_bounds = array<i64: 256, 16>}, {pipeline_mode = #tpu.pipeline_mode<synchronous>, transform_indices = @transform_1, window_bounds = array<i64: 16, 32>}, {pipeline_mode = #tpu.pipeline_mode<synchronous>, transform_indices = @transform_2, window_bounds = array<i64: 1, 32>}, {pipeline_mode = #tpu.pipeline_mode<synchronous>, transform_indices = @transform_3, window_bounds = array<i64: 32, 32>}, {pipeline_mode = #tpu.pipeline_mode<synchronous>, transform_indices = @transform_4, window_bounds = array<i64: 1, 32>}, {pipeline_mode = #tpu.pipeline_mode<synchronous>, transform_indices = @transform_5, window_bounds = array<i64: 32, 128>}, {pipeline_mode = #tpu.pipeline_mode<synchronous>, transform_indices = @transform_6, window_bounds = array<i64: 1, 128>}, {transform_indices = @transform_7, window_bounds = array<i64: 256, 128>}]} {
    %c0 = arith.constant 0 : index
    %c0_0 = arith.constant 0 : index
    %0 = vector.load %arg1[%c0, %c0_0] : memref<256x16xf32, #tpu.memory_space<vmem>>, vector<256x16xf32>
    %c0_1 = arith.constant 0 : index
    %c0_2 = arith.constant 0 : index
    %1 = vector.load %arg2[%c0_1, %c0_2] : memref<16x32xf32, #tpu.memory_space<vmem>>, vector<16x32xf32>
    %cst = arith.constant dense<0.000000e+00> : vector<256x32xf32>
    %2 = tpu.matmul %0, %1, %cst {dimension_numbers = #tpu.dot_dimension_numbers<[1], [0], [0], [1], [0, 0, 1, 1], [], []>} : vector<256x16xf32>, vector<16x32xf32>, vector<256x32xf32> -> vector<256x32xf32>
    %c0_3 = arith.constant 0 : index
    %c0_4 = arith.constant 0 : index
    %3 = vector.load %arg3[%c0_3, %c0_4] : memref<1x32xf32, #tpu.memory_space<vmem>>, vector<1x32xf32>
    %4 = vector.broadcast %3 : vector<1x32xf32> to vector<256x32xf32>
    %5 = arith.addf %2, %4 : vector<256x32xf32>
    %6 = math.tanh %5 : vector<256x32xf32>
    %c0_5 = arith.constant 0 : index
    %c0_6 = arith.constant 0 : index
    %7 = vector.load %arg4[%c0_5, %c0_6] : memref<32x32xf32, #tpu.memory_space<vmem>>, vector<32x32xf32>
    %cst_7 = arith.constant dense<0.000000e+00> : vector<256x32xf32>
    %8 = tpu.matmul %6, %7, %cst_7 {dimension_numbers = #tpu.dot_dimension_numbers<[1], [0], [0], [1], [0, 0, 1, 1], [], []>} : vector<256x32xf32>, vector<32x32xf32>, vector<256x32xf32> -> vector<256x32xf32>
    %c0_8 = arith.constant 0 : index
    %c0_9 = arith.constant 0 : index
    %9 = vector.load %arg5[%c0_8, %c0_9] : memref<1x32xf32, #tpu.memory_space<vmem>>, vector<1x32xf32>
    %10 = vector.broadcast %9 : vector<1x32xf32> to vector<256x32xf32>
    %11 = arith.addf %8, %10 : vector<256x32xf32>
    %12 = arith.negf %11 : vector<256x32xf32>
    %13 = math.exp %12 : vector<256x32xf32>
    %cst_10 = arith.constant 1.000000e+00 : f32
    %14 = vector.broadcast %cst_10 : f32 to vector<256x32xf32>
    %15 = arith.addf %14, %13 : vector<256x32xf32>
    %16 = arith.divf %14, %15 : vector<256x32xf32>
    %c0_11 = arith.constant 0 : index
    %c0_12 = arith.constant 0 : index
    %17 = vector.load %arg6[%c0_11, %c0_12] : memref<32x128xf32, #tpu.memory_space<vmem>>, vector<32x128xf32>
    %cst_13 = arith.constant dense<0.000000e+00> : vector<256x128xf32>
    %18 = tpu.matmul %16, %17, %cst_13 {dimension_numbers = #tpu.dot_dimension_numbers<[1], [0], [0], [1], [0, 0, 1, 1], [], []>} : vector<256x32xf32>, vector<32x128xf32>, vector<256x128xf32> -> vector<256x128xf32>
    %c0_14 = arith.constant 0 : index
    %c0_15 = arith.constant 0 : index
    %19 = vector.load %arg7[%c0_14, %c0_15] : memref<1x128xf32, #tpu.memory_space<vmem>>, vector<1x128xf32>
    %20 = vector.broadcast %19 : vector<1x128xf32> to vector<256x128xf32>
    %21 = arith.addf %18, %20 : vector<256x128xf32>
    %c0_16 = arith.constant 0 : index
    %c0_17 = arith.constant 0 : index
    %22 = vector.load %arg8[%c0_16, %c0_17] : memref<256x128xf32, #tpu.memory_space<vmem>>, vector<256x128xf32>
    tpu.vector_store %arg8[%c0_16, %c0_17], %21 {strides = array<i32>} : memref<256x128xf32, #tpu.memory_space<vmem>>, vector<256x128xf32>,
    return
  }
  func.func @transform_0(%arg0: i32) -> (i32, i32) {
    %c0_i32 = arith.constant 0 : i32
    %c0_i32_0 = arith.constant 0 : i32
    return %arg0, %c0_i32 : i32, i32
  }
  func.func @transform_1(%arg0: i32) -> (i32, i32) {
    %c0_i32 = arith.constant 0 : i32
    %c0_i32_0 = arith.constant 0 : i32
    %c0_i32_1 = arith.constant 0 : i32
    return %c0_i32, %c0_i32_0 : i32, i32
  }
  func.func @transform_2(%arg0: i32) -> (i32, i32) {
    %c0_i32 = arith.constant 0 : i32
    %c0_i32_0 = arith.constant 0 : i32
    %c0_i32_1 = arith.constant 0 : i32
    return %c0_i32, %c0_i32_0 : i32, i32
  }
  func.func @transform_3(%arg0: i32) -> (i32, i32) {
    %c0_i32 = arith.constant 0 : i32
    %c0_i32_0 = arith.constant 0 : i32
    %c0_i32_1 = arith.constant 0 : i32
    return %c0_i32, %c0_i32_0 : i32, i32
  }
  func.func @transform_4(%arg0: i32) -> (i32, i32) {
    %c0_i32 = arith.constant 0 : i32
    %c0_i32_0 = arith.constant 0 : i32
    %c0_i32_1 = arith.constant 0 : i32
    return %c0_i32, %c0_i32_0 : i32, i32
  }
  func.func @transform_5(%arg0: i32) -> (i32, i32) {
    %c0_i32 = arith.constant 0 : i32
    %c0_i32_0 = arith.constant 0 : i32
    %c0_i32_1 = arith.constant 0 : i32
    return %c0_i32, %c0_i32_0 : i32, i32
  }
  func.func @transform_6(%arg0: i32) -> (i32, i32) {
    %c0_i32 = arith.constant 0 : i32
    %c0_i32_0 = arith.constant 0 : i32
    %c0_i32_1 = arith.constant 0 : i32
    return %c0_i32, %c0_i32_0 : i32, i32
  }
  func.func @transform_7(%arg0: i32) -> (i32, i32) {
    %c0_i32 = arith.constant 0 : i32
    %c0_i32_0 = arith.constant 0 : i32
    return %arg0, %c0_i32 : i32, i32
  }
}

</mosaic_0001>

<bundles_post_ra>
// kernel: tpu_custom_call.1
= control target key start
LH: loop header
LB: loop body
LE: loop exit
PB: predicated region body
PF: predicated region fallthrough
CT: control target
= control target key end

     0   :  { %12 = vsyncpa [#allocation3], 0  ;;  %s2852_s0 = inlined_call_operand.vmem [shape: f32[512,16], index: 0, kind: input, shape index: {}]   ;;  %s2853_s1 = inlined_call_operand.vmem [shape: f32[16,32], index: 1, kind: input, shape index: {}]   ;;  %s2854_s2 = inlined_call_operand.vmem [shape: f32[1,32], index: 2, kind: input, shape index: {}]   ;;  %s2855_s3 = inlined_call_operand.vmem [shape: f32[32,32], index: 3, kind: input, shape index: {}]   ;;  %s2856_s4 = inlined_call_operand.vmem [shape: f32[1,32], index: 4, kind: input, shape index: {}]   ;;  %s2857_s5 = inlined_call_operand.vmem [shape: f32[32,128], index: 5, kind: input, shape index: {}]   ;;  %s2858_s6 = inlined_call_operand.vmem [shape: f32[1,128], index: 6, kind: input, shape index: {}]   ;;  %s2859_s7 = inlined_call_operand.hbm [shape: f32[512,128], index: 7, kind: output, shape index: {}]  }
   0x1   :  { %14 = vsyncpa [#allocation3 + $0x1], 0  ;;  %s2416_s24 = smov 0   ;;  %s2418_s25 = smov 0  }
   0x2   :  { %s2420_s26 = smov 0   ;;  %s2422_s27 = smov 0  }
   0x3 LB: > { %s2437_s28 = sadd.s32 4294967295, %s2371_s27   ;;  %s1640_s29 = sadd.s32 4294967294, %s2371_s27   ;;  %s2371_s27 = sphi %s2422_s27, %s2865_s27   ;;  %s2367_s26 = sphi %s2420_s26, %s2864_s26   ;;  %s2363_s25 = sphi %s2418_s25, %s2863_s25   ;;  %s2359_s24 = sphi %s2416_s24, %s2862_s24  }
   0x4   : > { %s2441_s30 = sadd.s32 1, %s2371_s27   ;;  %s179_s8 = sadd.s32 1, %s2367_s26 }
   0x5   : > { %s176_s9 = ssub.s32 %s2371_s27, %s2441_s30  ;;  %p189_p0 = scmp.ne.s32.totalorder %s2367_s26, %s2363_s25 }
   0x6   : > { %p177_p1 = scmp.eq.s32.totalorder %s176_s9, 0  ;;  %p190_p2 = scmp.eq.s32.totalorder %s2437_s28, 1 }
   0x7   : > { %p195_p3 = scmp.ne.s32.totalorder %s2363_s25, %s2359_s24  ;;  %p196_p4 = scmp.eq.s32.totalorder %s1640_s29, 1 }
   0x8   : > { %s2452_s10 = scalar_select %p177_p1, %s2367_s26, %s179_s8  }
   0x9   : > { %p2454_p5 = por %p190_p2, %p189_p0  ;;  %p2458_p6 = por %p196_p4, %p195_p3 }
   0xa   : > { %p1643_p7 = scmp.ge.s32.totalorder %s2371_s27, 1  ;;  %p241_p8 = scmp.lt.s32.totalorder %s2371_s27, 3 }
   0xc   : > { %p242_p9 = pnand %p1643_p7, %p241_p8 }
   0xd   : > { %v312_v0 = vld [vmem:[%s2853_s1] sm:$0xff] (!%p242_p9)  ;;  %v313_v1 = vld [vmem:[%s2853_s1 + $0x8] sm:$0xff] (!%p242_p9)  ;;  %s1645_s17 = sshll.u32 (!%p242_p9), %s2437_s28, 5  ;;  %vm321_vm0 = vcmask (!%p242_p9), 130048   ;;  %v677_v9 = vld [vmem:[%s2855_s3 + $0x10] sm:$0xff] (!%p242_p9)  ;;  %vm686_vm1 = vcmask (!%p242_p9), 261120  }
   0xe   : > { %245 = sbr.rel (%p242_p9) target bundleno = 788 (0x314), region = 48  ;;  %v675_v2 = vld [vmem:[%s2855_s3] sm:$0xff] (!%p242_p9)  ;;  %v2054_v3 = vpack.c.bf16 (!%p242_p9), %v313_v1, %v312_v0  ;;  %p274_p10 = scmp.lt.s32.totalorder (!%p242_p9), %s1645_s17, 63  ;;  %v676_v4 = vld [vmem:[%s2855_s3 + $0x8] sm:$0xff] (!%p242_p9)  ;;  %v678_v10 = vld [vmem:[%s2855_s3 + $0x18] sm:$0xff] (!%p242_p9) }
   0xf   : > { %v2058_v5 = vpack.c.bf16 (!%p242_p9), %v676_v4, %v675_v2  ;;  %v2062_v15 = vpack.c.bf16 (!%p242_p9), %v678_v10, %v677_v9  ;;  %v1200_v41 = vld [vmem:[%s2857_s5] sm:$0xff] (!%p242_p9)  ;;  %v1201_v42 = vld [vmem:[%s2857_s5 + $0x8] sm:$0xff] (!%p242_p9)  ;;  %s270_s14 = sand.u32 (!%p242_p9), 1, %s2363_s25   ;;  %s1783_s19 = sshll.u32 (!%p242_p9), %s2437_s28, 12 }
  0x10   : > { %2055 = vmatprep.subr.bf16.mxu0 (!%p242_p9), %v2054_v3  ;;  %2074 = vmatprep.subr.bf16.mxu1 (!%p242_p9), %v2054_v3  ;;  %v2066_v43 = vpack.c.bf16 (!%p242_p9), %v1201_v42, %v1200_v41  ;;  %v2561_v44 = vld [vmem:[%s2854_s2] ss:$0 sm:$0xff] (!%p242_p9)  ;;  %s1644_s15 = sshll.u32 (!%p242_p9), %s270_s14, 8  ;;  %s2802_s23 = scalar_lea.hbm (!%p242_p9), %s2859_s7, %s1783_s19 }
  0x11   : > { %2057 = vmatpush3.bf16.msra.mxu0 (!%p242_p9), %v2054_v3  ;;  %2075 = vmatpush3.bf16.msra.mxu1 (!%p242_p9), %v2054_v3  ;;  %s2736_s18 = scalar_lea.vmem (!%p242_p9), [#allocation2], %s1644_s15  ;;  %s2811_s28 = scalar_lea.sflag (!%p242_p9), [#allocation3], %s270_s14 }
  0x12   : > { %2059 = vmatprep.subr.bf16.mxu1 (!%p242_p9), %v2058_v5  ;;  %2067 = vmatprep.subr.bf16.mxu0 (!%p242_p9), %v2066_v43  ;;  %s1578_s20 = sshll.u32 (!%p242_p9), %s2736_s18, 4  ;;  %s2804_s20 = int_to_ptr.vmem [resolvable:$true] %s1578_s20 }
  0x13   : > { %s2309_s29 = scalar_lea.vmem (!%p242_p9), %s2804_s20, 4096 }
  0x14   : > { %p2310_p11 = scmp.ne.s32.totalorder (!%p242_p9), %s2804_s20, %s2309_s29 }
  0x15   : > { %s2867_s17 = smov (!%p274_p10, %s1645_s17), 63 }
  0x16   : > { %s1646_s22 = sshll.u32 %s2867_s17, 3  ;;  %p2311_p12 = pnand %p2310_p11, %p2454_p5 }
  0x17   : > { %s2480_s8 = scalar_lea.vmem %s2852_s0, %s1646_s22 }
  0x18   : > { %v280_v6 = vld [vmem:[%s2480_s8] sm:$0xff]  ;;  %v281_v7 = vld [vmem:[%s2480_s8 + $0x8] sm:$0xff]  ;;  %v282_v8 = vld [vmem:[%s2480_s8 + $0x10] sm:$0xff]  ;;  %p2312_p13 = pneg %p2311_p12 }
  0x19   : > { %1894 = vmatprep.mubr.msk.f32.mxu0 %vm321_vm0, %v280_v6  ;;  %v283_v11 = vld [vmem:[%s2480_s8 + $0x18] sm:$0xff]  ;;  %v284_v12 = vld [vmem:[%s2480_s8 + $0x20] sm:$0xff]  ;;  %v297_v14 = vld [vmem:[%s2480_s8 + $0x88] sm:$0xff] }
  0x1a   : > { %1895 = vmatmul.mubr.msk.f32.vlgmr.msra.gmra.mrb[0].mxu0 %vm321_vm0, %v281_v7  ;;  %v296_v13 = vld [vmem:[%s2480_s8 + $0x80] sm:$0xff]  ;;  %v298_v16 = vld [vmem:[%s2480_s8 + $0x90] sm:$0xff]  ;;  %v285_v17 = vld [vmem:[%s2480_s8 + $0x28] sm:$0xff] }
  0x1b   : > { %1897 = vmatprep.mubr.msk.f32.mxu0 %vm321_vm0, %v282_v8  ;;  %1918 = vmatprep.mubr.msk.f32.mxu1 %vm321_vm0, %v296_v13  ;;  %v286_v18 = vld [vmem:[%s2480_s8 + $0x30] sm:$0xff]  ;;  %v299_v19 = vld [vmem:[%s2480_s8 + $0x98] sm:$0xff]  ;;  %v300_v20 = vld [vmem:[%s2480_s8 + $0xa0] sm:$0xff] }
  0x1c   : > { %1919 = vmatmul.mubr.msk.f32.vlgmr.msra.gmra.mrb[0].mxu1 %vm321_vm0, %v297_v14  ;;  %v287_v21 = vld [vmem:[%s2480_s8 + $0x38] sm:$0xff]  ;;  %v288_v22 = vld [vmem:[%s2480_s8 + $0x40] sm:$0xff]  ;;  %v301_v23 = vld [vmem:[%s2480_s8 + $0xa8] sm:$0xff]  ;;  %2069 = vmatpush3.bf16.msra.mxu0 %v2066_v43 }
  0x1d   : > { %1921 = vmatprep.mubr.msk.f32.mxu1 %vm321_vm0, %v298_v16  ;;  %2061 = vmatpush3.bf16.msra.mxu1 %v2058_v5  ;;  %v302_v24 = vld [vmem:[%s2480_s8 + $0xb0] sm:$0xff]  ;;  %v289_v25 = vld [vmem:[%s2480_s8 + $0x48] sm:$0xff]  ;;  %v303_v27 = vld [vmem:[%s2480_s8 + $0xb8] sm:$0xff] }
  0x1e   : > { %1898 = vmatmul.mubr.msk.f32.gmra.mrb[2].mxu0 %vm321_vm0, %v283_v11  ;;  %2063 = vmatprep.subr.bf16.mxu1 %v2062_v15  ;;  %v290_v26 = vld [vmem:[%s2480_s8 + $0x50] sm:$0xff]  ;;  %v304_v28 = vld [vmem:[%s2480_s8 + $0xc0] sm:$0xff]  ;;  %v291_v29 = vld [vmem:[%s2480_s8 + $0x58] sm:$0xff] }
  0x1f   : > { %1900 = vmatprep.mubr.msk.f32.mxu0 %vm321_vm0, %v284_v12  ;;  %v292_v30 = vld [vmem:[%s2480_s8 + $0x60] sm:$0xff]  ;;  %v305_v31 = vld [vmem:[%s2480_s8 + $0xc8] sm:$0xff]  ;;  %v306_v32 = vld [vmem:[%s2480_s8 + $0xd0] sm:$0xff] }
  0x20   : > { %1922 = vmatmul.mubr.msk.f32.gmra.mrb[2].mxu1 %vm321_vm0, %v299_v19  ;;  %v293_v33 = vld [vmem:[%s2480_s8 + $0x68] sm:$0xff]  ;;  %v294_v34 = vld [vmem:[%s2480_s8 + $0x70] sm:$0xff]  ;;  %v307_v35 = vld [vmem:[%s2480_s8 + $0xd8] sm:$0xff] }
  0x21   : > { %1924 = vmatprep.mubr.msk.f32.mxu1 %vm321_vm0, %v300_v20  ;;  %2065 = vmatpush3.bf16.msra.mxu1 %v2062_v15  ;;  %v308_v36 = vld [vmem:[%s2480_s8 + $0xe0] sm:$0xff]  ;;  %v295_v37 = vld [vmem:[%s2480_s8 + $0x78] sm:$0xff]  ;;  %v309_v38 = vld [vmem:[%s2480_s8 + $0xe8] sm:$0xff] }
  0x22   : > { %1901 = vmatmul.mubr.msk.f32.gmra.mrb[4].mxu0 %vm321_vm0, %v285_v17  ;;  %v310_v39 = vld [vmem:[%s2480_s8 + $0xf0] sm:$0xff]  ;;  %v311_v40 = vld [vmem:[%s2480_s8 + $0xf8] sm:$0xff]  ;;  %s2373_s8 = smov [#allocation2]  }
  0x23   : > { %1903 = vmatprep.mubr.msk.f32.mxu0 %vm321_vm0, %v286_v18  ;;  %s2313_s9 = sshll.u32 %s2373_s8, 4  ;;  %s2314_s9 = int_to_ptr.vmem [resolvable:$false] %s2313_s9 }
  0x24   : > { %1925 = vmatmul.mubr.msk.f32.gmra.mrb[4].mxu1 %vm321_vm0, %v301_v23  ;;  %s2315_s13 = scalar_lea.vmem %s2314_s9, 8192  ;;  %p2316_p0 = scmp.lt.s32.totalorder %s2804_s20, %s2314_s9 }
  0x25   : > { %1927 = vmatprep.mubr.msk.f32.mxu1 %vm321_vm0, %v302_v24  ;;  %p2317_p1 = scmp.lt.s32.totalorder %s2315_s13, %s2309_s29 }
  0x26   : > { %1904 = vmatmul.mubr.msk.f32.gmra.mrb[6].mxu0 %vm321_vm0, %v287_v21 }
  0x27   : > { %1906 = vmatprep.mubr.msk.f32.mxu0 %vm321_vm0, %v288_v22  ;;  %p2318_p2 = por %p2317_p1, %p2316_p0 }
  0x28   : > { %1928 = vmatmul.mubr.msk.f32.gmra.mrb[6].mxu1 %vm321_vm0, %v303_v27 }
  0x29   : > { %1930 = vmatprep.mubr.msk.f32.mxu1 %vm321_vm0, %v304_v28  ;;  %p2319_p3 = pnand %p2318_p2, %p2312_p13 }
  0x2a   : > { %1907 = vmatmul.mubr.msk.f32.gmra.mrb[8].mxu0 %vm321_vm0, %v289_v25 }
  0x2b   : > { %1909 = vmatprep.mubr.msk.f32.mxu0 %vm321_vm0, %v290_v26 }
  0x2c   : > { %1931 = vmatmul.mubr.msk.f32.gmra.mrb[8].mxu1 %vm321_vm0, %v305_v31 }
  0x2d   : > { %1933 = vmatprep.mubr.msk.f32.mxu1 %vm321_vm0, %v306_v32 }
  0x2e   : > { %1910 = vmatmul.mubr.msk.f32.gmra.mrb[10].mxu0 %vm321_vm0, %v291_v29 }
  0x2f   : > { %1912 = vmatprep.mubr.msk.f32.mxu0 %vm321_vm0, %v292_v30 }
  0x30   : > { %1934 = vmatmul.mubr.msk.f32.gmra.mrb[10].mxu1 %vm321_vm0, %v307_v35 }
  0x31   : > { %1936 = vmatprep.mubr.msk.f32.mxu1 %vm321_vm0, %v308_v36 }
  0x32   : > { %1913 = vmatmul.mubr.msk.f32.gmra.mrb[12].mxu0 %vm321_vm0, %v293_v33 }
  0x33   : > { %1915 = vmatprep.mubr.msk.f32.mxu0 %vm321_vm0, %v294_v34 }
  0x34   : > { %1937 = vmatmul.mubr.msk.f32.gmra.mrb[12].mxu1 %vm321_vm0, %v309_v38 }
  0x35   : > { %1939 = vmatprep.mubr.msk.f32.mxu1 %vm321_vm0, %v310_v39 }
  0x36   : > { %1916 = vmatmul.mubr.msk.f32.gmra.mrb[14].mxu0 %vm321_vm0, %v295_v37 }
  0x38   : > { %1940 = vmatmul.mubr.msk.f32.gmra.mrb[14].mxu1 %vm321_vm0, %v311_v40 }
  0xed   : > { %v1896_v45 = vpop.f32.mrb[0].mxu0 }
  0xee   : > { %v490_v46 = vadd.f32 %v1896_v45, %v2561_v44  ;;  %v484_v47 = vpop.f32.mrb[1].mxu0 }
  0xef   : > { %v485_v48 = vadd.f32 %v2561_v44, %v484_v47  ;;  %v2566_v52 = vpop.f32.mrb[0].mxu1 }
  0xf0   : > { %v564_v54 = vpop.f32.mrb[1].mxu1  ;;  %v570_v39 = vadd.f32 %v2566_v52, %v2561_v44 }
  0xf1   : > { %2117 = vtanh.f32 %v485_v48  ;;  %v1899_v49 = vpop.f32.mrb[2].mxu0  ;;  %v565_v29 = vadd.f32 %v2561_v44, %v564_v54 }
  0xf2   : > { %2119 = vtanh.f32 %v490_v46  ;;  %v500_v50 = vadd.f32 %v1899_v49, %v2561_v44  ;;  %v494_v51 = vpop.f32.mrb[3].mxu0 }
  0xf3   : > { %v495_v53 = vadd.f32 %v2561_v44, %v494_v51  ;;  %v2570_v58 = vpop.f32.mrb[2].mxu1 }
  0xf4   : > { %v2573_v60 = vpop.f32.mrb[3].mxu1  ;;  %v580_v46 = vadd.f32 %v2570_v58, %v2561_v44 }
  0xf5   : > { %2121 = vtanh.f32 %v495_v53  ;;  %v1902_v55 = vpop.f32.mrb[4].mxu0  ;;  %v575_v38 = vadd.f32 %v2561_v44, %v2573_v60 }
  0xf6   : > { %2123 = vtanh.f32 %v500_v50  ;;  %v510_v56 = vadd.f32 %v1902_v55, %v2561_v44  ;;  %v504_v57 = vpop.f32.mrb[5].mxu0 }
  0xf7   : > { %v505_v59 = vadd.f32 %v2561_v44, %v504_v57  ;;  %v2576_v0 = vpop.f32.mrb[4].mxu1 }
  0xf8   : > { %v2579_v3 = vpop.f32.mrb[5].mxu1  ;;  %v590_v51 = vadd.f32 %v2576_v0, %v2561_v44 }
  0xf9   : > { %2125 = vtanh.f32 %v505_v59  ;;  %v1905_v61 = vpop.f32.mrb[6].mxu0  ;;  %v585_v45 = vadd.f32 %v2561_v44, %v2579_v3 }
  0xfa   : > { %2127 = vtanh.f32 %v510_v56  ;;  %v520_v62 = vadd.f32 %v1905_v61, %v2561_v44  ;;  %v514_v63 = vpop.f32.mrb[7].mxu0 }
  0xfb   : > { %v2118_v1 = vpop.eup %2117  ;;  %v515_v2 = vadd.f32 %v2561_v44, %v514_v63  ;;  %v2584_v8 = vpop.f32.mrb[6].mxu1 }
  0xfc   : > { %v2120_v4 = vpop.eup %2119  ;;  %1950 = vmatprep.mubr.msk.f32.mxu1 %vm686_vm1, %v2118_v1  ;;  %v594_v11 = vpop.f32.mrb[7].mxu1  ;;  %v600_v55 = vadd.f32 %v2584_v8, %v2561_v44 }
  0xfd   : > { %2129 = vtanh.f32 %v515_v2  ;;  %v1908_v5 = vpop.f32.mrb[8].mxu0  ;;  %1951 = vmatmul.mubr.msk.f32.vlgmr.msra.gmra.mrb[16].mxu1 %vm686_vm1, %v2120_v4  ;;  %v595_v49 = vadd.f32 %v2561_v44, %v594_v11 }
  0xfe   : > { %2131 = vtanh.f32 %v520_v62  ;;  %v530_v6 = vadd.f32 %v1908_v5, %v2561_v44  ;;  %v524_v7 = vpop.f32.mrb[9].mxu0 }
  0xff   : > { %v2122_v9 = vpop.eup %2121  ;;  %v525_v10 = vadd.f32 %v2561_v44, %v524_v7  ;;  %v2590_v16 = vpop.f32.mrb[8].mxu1 }
 0x100   : > { %v2124_v12 = vpop.eup %2123  ;;  %1953 = vmatprep.mubr.msk.f32.mxu1 %vm686_vm1, %v2122_v9  ;;  %v604_v19 = vpop.f32.mrb[9].mxu1  ;;  %v610_v59 = vadd.f32 %v2590_v16, %v2561_v44  ;;  %v2660_v16 = vld [vmem:[%s2856_s4] ss:$0 sm:$0xff] }
 0x101   : > { %2133 = vtanh.f32 %v525_v10  ;;  %v1911_v13 = vpop.f32.mrb[10].mxu0  ;;  %1954 = vmatmul.mubr.msk.f32.gmra.mrb[18].mxu1 %vm686_vm1, %v2124_v12  ;;  %v605_v54 = vadd.f32 %v2561_v44, %v604_v19 }
 0x102   : > { %2135 = vtanh.f32 %v530_v6  ;;  %v540_v14 = vadd.f32 %v1911_v13, %v2561_v44  ;;  %v534_v15 = vpop.f32.mrb[11].mxu0  ;;  %v1202_v13 = vld [vmem:[%s2857_s5 + $0x10] sm:$0xff] }
 0x103   : > { %v2126_v17 = vpop.eup %2125  ;;  %v535_v18 = vadd.f32 %v2561_v44, %v534_v15  ;;  %v2596_v24 = vpop.f32.mrb[10].mxu1 }
 0x104   : > { %v2128_v20 = vpop.eup %2127  ;;  %1956 = vmatprep.mubr.msk.f32.mxu1 %vm686_vm1, %v2126_v17  ;;  %v614_v27 = vpop.f32.mrb[11].mxu1  ;;  %v620_v63 = vadd.f32 %v2596_v24, %v2561_v44 }
 0x105   : > { %2137 = vtanh.f32 %v535_v18  ;;  %v1914_v21 = vpop.f32.mrb[12].mxu0  ;;  %1957 = vmatmul.mubr.msk.f32.gmra.mrb[20].mxu1 %vm686_vm1, %v2128_v20  ;;  %v615_v58 = vadd.f32 %v2561_v44, %v614_v27 }
 0x106   : > { %2139 = vtanh.f32 %v540_v14  ;;  %v550_v22 = vadd.f32 %v1914_v21, %v2561_v44  ;;  %v544_v23 = vpop.f32.mrb[13].mxu0  ;;  %v1203_v14 = vld [vmem:[%s2857_s5 + $0x18] sm:$0xff] }
 0x107   : > { %v2130_v25 = vpop.eup %2129  ;;  %v545_v26 = vadd.f32 %v2561_v44, %v544_v23  ;;  %v1938_v33 = vpop.f32.mrb[12].mxu1  ;;  %v2070_v15 = vpack.c.bf16 %v1203_v14, %v1202_v13 }
 0x108   : > { %v2132_v28 = vpop.eup %2131  ;;  %1959 = vmatprep.mubr.msk.f32.mxu1 %vm686_vm1, %v2130_v25  ;;  %v624_v36 = vpop.f32.mrb[13].mxu1  ;;  %v630_v3 = vadd.f32 %v1938_v33, %v2561_v44 }
 0x109   : > { %2141 = vtanh.f32 %v545_v26  ;;  %v1917_v30 = vpop.f32.mrb[14].mxu0  ;;  %1960 = vmatmul.mubr.msk.f32.gmra.mrb[22].mxu1 %vm686_vm1, %v2132_v28  ;;  %v625_v62 = vadd.f32 %v2561_v44, %v624_v36  ;;  %2071 = vmatprep.subr.bf16.mxu0 %v2070_v15 }
 0x10a   : > { %2143 = vtanh.f32 %v550_v22  ;;  %v560_v31 = vadd.f32 %v1917_v30, %v2561_v44  ;;  %v554_v32 = vpop.f32.mrb[15].mxu0  ;;  %2073 = vmatpush3.bf16.msra.mxu0 %v2070_v15 }
 0x10b   : > { %v2134_v34 = vpop.eup %2133  ;;  %v555_v35 = vadd.f32 %v2561_v44, %v554_v32  ;;  %2145 = vtanh.f32 %v565_v29  ;;  %v1941_v40 = vpop.f32.mrb[14].mxu1 }
 0x10c   : > { %v2136_v37 = vpop.eup %2135  ;;  %1962 = vmatprep.mubr.msk.f32.mxu1 %vm686_vm1, %v2134_v34  ;;  %v634_v42 = vpop.f32.mrb[15].mxu1  ;;  %v640_v6 = vadd.f32 %v1941_v40, %v2561_v44 }
 0x10d   : > { %2147 = vtanh.f32 %v555_v35  ;;  %1963 = vmatmul.mubr.msk.f32.gmra.mrb[24].mxu1 %vm686_vm1, %v2136_v37  ;;  %v635_v2 = vadd.f32 %v2561_v44, %v634_v42 }
 0x10e   : > { %2149 = vtanh.f32 %v560_v31 }
 0x10f   : > { %v2138_v41 = vpop.eup %2137  ;;  %2151 = vtanh.f32 %v575_v38 }
 0x110   : > { %v2140_v43 = vpop.eup %2139  ;;  %1965 = vmatprep.mubr.msk.f32.mxu1 %vm686_vm1, %v2138_v41  ;;  %2153 = vtanh.f32 %v570_v39 }
 0x111   : > { %1966 = vmatmul.mubr.msk.f32.gmra.mrb[26].mxu1 %vm686_vm1, %v2140_v43  ;;  %2155 = vtanh.f32 %v585_v45 }
 0x112   : > { %2157 = vtanh.f32 %v580_v46 }
 0x113   : > { %v2142_v47 = vpop.eup %2141  ;;  %2159 = vtanh.f32 %v595_v49 }
 0x114   : > { %v2144_v48 = vpop.eup %2143  ;;  %1968 = vmatprep.mubr.msk.f32.mxu1 %vm686_vm1, %v2142_v47  ;;  %2161 = vtanh.f32 %v590_v51 }
 0x115   : > { %1969 = vmatmul.mubr.msk.f32.gmra.mrb[28].mxu1 %vm686_vm1, %v2144_v48  ;;  %v2146_v50 = vpop.eup %2145  ;;  %2163 = vtanh.f32 %v605_v54 }
 0x116   : > { %2165 = vtanh.f32 %v600_v55 }
 0x117   : > { %v2148_v52 = vpop.eup %2147  ;;  %2167 = vtanh.f32 %v615_v58 }
 0x118   : > { %v2150_v53 = vpop.eup %2149  ;;  %1971 = vmatprep.mubr.msk.f32.mxu1 %vm686_vm1, %v2148_v52  ;;  %2169 = vtanh.f32 %v610_v59 }
 0x119   : > { %1972 = vmatmul.mubr.msk.f32.gmra.mrb[30].mxu1 %vm686_vm1, %v2150_v53  ;;  %v2152_v56 = vpop.eup %2151  ;;  %2171 = vtanh.f32 %v625_v62 }
 0x11a   : > { %1974 = vmatprep.mubr.msk.f32.mxu1 %vm686_vm1, %v2146_v50  ;;  %v2154_v57 = vpop.eup %2153  ;;  %2173 = vtanh.f32 %v620_v63 }
 0x11b   : > { %v2156_v60 = vpop.eup %2155  ;;  %2175 = vtanh.f32 %v635_v2 }
 0x11c   : > { %v2158_v61 = vpop.eup %2157  ;;  %2177 = vtanh.f32 %v630_v3 }
 0x11d   : > { %1975 = vmatmul.mubr.msk.f32.gmra.mrb[32].mxu1 %vm686_vm1, %v2154_v57  ;;  %v2160_v0 = vpop.eup %2159  ;;  %2179 = vtanh.f32 %v640_v6 }
 0x11e   : > { %1977 = vmatprep.mubr.msk.f32.mxu1 %vm686_vm1, %v2152_v56  ;;  %v2162_v1 = vpop.eup %2161 }
 0x11f   : > { %v2164_v4 = vpop.eup %2163 }
 0x120   : > { %v2166_v5 = vpop.eup %2165 }
 0x121   : > { %1978 = vmatmul.mubr.msk.f32.gmra.mrb[34].mxu1 %vm686_vm1, %v2158_v61  ;;  %v2168_v7 = vpop.eup %2167 }
 0x122   : > { %1980 = vmatprep.mubr.msk.f32.mxu1 %vm686_vm1, %v2156_v60  ;;  %v2170_v8 = vpop.eup %2169 }
 0x123   : > { %v2172_v9 = vpop.eup %2171 }
 0x124   : > { %v2174_v10 = vpop.eup %2173 }
 0x125   : > { %1981 = vmatmul.mubr.msk.f32.gmra.mrb[36].mxu1 %vm686_vm1, %v2162_v1  ;;  %v2176_v11 = vpop.eup %2175 }
 0x126   : > { %1983 = vmatprep.mubr.msk.f32.mxu1 %vm686_vm1, %v2160_v0  ;;  %v2178_v12 = vpop.eup %2177 }
 0x127   : > { %v2180_v44 = vpop.eup %2179 }
 0x129   : > { %1984 = vmatmul.mubr.msk.f32.gmra.mrb[38].mxu1 %vm686_vm1, %v2166_v5 }
 0x12a   : > { %1986 = vmatprep.mubr.msk.f32.mxu1 %vm686_vm1, %v2164_v4 }
 0x12d   : > { %1987 = vmatmul.mubr.msk.f32.gmra.mrb[40].mxu1 %vm686_vm1, %v2170_v8 }
 0x12e   : > { %1989 = vmatprep.mubr.msk.f32.mxu1 %vm686_vm1, %v2168_v7 }
 0x131   : > { %1990 = vmatmul.mubr.msk.f32.gmra.mrb[42].mxu1 %vm686_vm1, %v2174_v10 }
 0x132   : > { %1992 = vmatprep.mubr.msk.f32.mxu1 %vm686_vm1, %v2172_v9 }
 0x135   : > { %1993 = vmatmul.mubr.msk.f32.gmra.mrb[44].mxu1 %vm686_vm1, %v2178_v12 }
 0x136   : > { %1995 = vmatprep.mubr.msk.f32.mxu1 %vm686_vm1, %v2176_v11 }
 0x139   : > { %1996 = vmatmul.mubr.msk.f32.gmra.mrb[46].mxu1 %vm686_vm1, %v2180_v44 }
 0x1d0   : > { %v1952_v17 = vpop.f32.mrb[16].mxu1 }
 0x1d1   : > { %v855_v18 = vadd.f32 %v1952_v17, %v2660_v16  ;;  %v849_v19 = vpop.f32.mrb[17].mxu1 }
 0x1d2   : > { %v850_v20 = vadd.f32 %v2660_v16, %v849_v19 }
 0x1d3   : > { %v1714_v21 = vmul.f32 -1.442695, %v855_v18 }
 0x1d4   : > { %v1713_v22 = vmul.f32 -1.442695, %v850_v20  ;;  %v1955_v23 = vpop.f32.mrb[18].mxu1 }
 0x1d5   : > { %2181 = vpow2.f32 %v1714_v21  ;;  %v865_v24 = vadd.f32 %v1955_v23, %v2660_v16  ;;  %v859_v25 = vpop.f32.mrb[19].mxu1 }
 0x1d6   : > { %2183 = vpow2.f32 %v1713_v22  ;;  %v860_v26 = vadd.f32 %v2660_v16, %v859_v25 }
 0x1d7   : > { %v1716_v27 = vmul.f32 -1.442695, %v865_v24 }
 0x1d8   : > { %v1715_v28 = vmul.f32 -1.442695, %v860_v26  ;;  %v1958_v29 = vpop.f32.mrb[20].mxu1 }
 0x1d9   : > { %2185 = vpow2.f32 %v1716_v27  ;;  %v875_v30 = vadd.f32 %v1958_v29, %v2660_v16  ;;  %v869_v31 = vpop.f32.mrb[21].mxu1 }
 0x1da   : > { %2187 = vpow2.f32 %v1715_v28  ;;  %v870_v32 = vadd.f32 %v2660_v16, %v869_v31 }
 0x1db   : > { %v1718_v33 = vmul.f32 -1.442695, %v875_v30 }
 0x1dc   : > { %v1717_v34 = vmul.f32 -1.442695, %v870_v32  ;;  %v1961_v35 = vpop.f32.mrb[22].mxu1 }
 0x1dd   : > { %2189 = vpow2.f32 %v1718_v33  ;;  %v885_v36 = vadd.f32 %v1961_v35, %v2660_v16  ;;  %v879_v37 = vpop.f32.mrb[23].mxu1 }
 0x1de   : > { %2191 = vpow2.f32 %v1717_v34  ;;  %v880_v38 = vadd.f32 %v2660_v16, %v879_v37 }
 0x1df   : > { %v2182_v39 = vpop.eup %2181  ;;  %v1720_v40 = vmul.f32 -1.442695, %v885_v36 }
 0x1e0   : > { %v2184_v41 = vpop.eup %2183  ;;  %v1105_v42 = vadd.f32 1.0, %v2182_v39  ;;  %v1719_v43 = vmul.f32 -1.442695, %v880_v38  ;;  %v1964_v45 = vpop.f32.mrb[24].mxu1 }
 0x1e1   : > { %v1104_v46 = vadd.f32 1.0, %v2184_v41  ;;  %2193 = vpow2.f32 %v1720_v40  ;;  %v895_v47 = vadd.f32 %v1964_v45, %v2660_v16  ;;  %v889_v48 = vpop.f32.mrb[25].mxu1 }
 0x1e2   : > { %2195 = vrcp.f32 %v1105_v42  ;;  %v890_v49 = vadd.f32 %v2660_v16, %v889_v48 }
 0x1e3   : > { %v2186_v50 = vpop.eup %2185  ;;  %2197 = vrcp.f32 %v1104_v46  ;;  %v1722_v51 = vmul.f32 -1.442695, %v895_v47 }
 0x1e4   : > { %v2188_v52 = vpop.eup %2187  ;;  %v1107_v53 = vadd.f32 1.0, %v2186_v50  ;;  %2199 = vpow2.f32 %v1719_v43  ;;  %v1721_v54 = vmul.f32 -1.442695, %v890_v49  ;;  %v1967_v55 = vpop.f32.mrb[26].mxu1 }
 0x1e5   : > { %v1106_v56 = vadd.f32 1.0, %v2188_v52  ;;  %2201 = vpow2.f32 %v1722_v51  ;;  %v905_v57 = vadd.f32 %v1967_v55, %v2660_v16  ;;  %v899_v58 = vpop.f32.mrb[27].mxu1 }
 0x1e6   : > { %2203 = vrcp.f32 %v1107_v53  ;;  %v900_v59 = vadd.f32 %v2660_v16, %v899_v58 }
 0x1e7   : > { %v2190_v60 = vpop.eup %2189  ;;  %2205 = vrcp.f32 %v1106_v56  ;;  %v1724_v61 = vmul.f32 -1.442695, %v905_v57 }
 0x1e8   : > { %v2192_v62 = vpop.eup %2191  ;;  %v1109_v63 = vadd.f32 1.0, %v2190_v60  ;;  %2207 = vpow2.f32 %v1721_v54  ;;  %v1723_v0 = vmul.f32 -1.442695, %v900_v59  ;;  %v1970_v1 = vpop.f32.mrb[28].mxu1 }
 0x1e9   : > { %v1108_v2 = vadd.f32 1.0, %v2192_v62  ;;  %2209 = vpow2.f32 %v1724_v61  ;;  %v915_v3 = vadd.f32 %v1970_v1, %v2660_v16  ;;  %v909_v4 = vpop.f32.mrb[29].mxu1 }
 0x1ea   : > { %2211 = vrcp.f32 %v1109_v63  ;;  %v910_v5 = vadd.f32 %v2660_v16, %v909_v4 }
 0x1eb   : > { %v2194_v6 = vpop.eup %2193  ;;  %2213 = vrcp.f32 %v1108_v2  ;;  %v1726_v7 = vmul.f32 -1.442695, %v915_v3 }
 0x1ec   : > { %v2196_v8 = vpop.eup %2195  ;;  %v1111_v9 = vadd.f32 1.0, %v2194_v6  ;;  %2215 = vpow2.f32 %v1723_v0  ;;  %v1725_v10 = vmul.f32 -1.442695, %v910_v5  ;;  %v1973_v11 = vpop.f32.mrb[30].mxu1 }
 0x1ed   : > { %v2198_v12 = vpop.eup %2197  ;;  %2217 = vpow2.f32 %v1726_v7  ;;  %v925_v44 = vadd.f32 %v1973_v11, %v2660_v16  ;;  %v919_v13 = vpop.f32.mrb[31].mxu1 }
 0x1ee   : > { %v2200_v14 = vpop.eup %2199  ;;  %v920_v15 = vadd.f32 %v2660_v16, %v919_v13  ;;  %2006 = vmatprep.mubr.msk.f32.mxu0 %vm686_vm1, %v2198_v12  ;;  %2219 = vpow2.f32 %v1725_v10 }
 0x1ef   : > { %v2202_v17 = vpop.eup %2201  ;;  %v1110_v18 = vadd.f32 1.0, %v2200_v14  ;;  %v1728_v19 = vmul.f32 -1.442695, %v925_v44  ;;  %2007 = vmatmul.mubr.msk.f32.vlgmr.msra.gmra.mrb[16].mxu0 %vm686_vm1, %v2196_v8  ;;  %2221 = vrcp.f32 %v1111_v9 }
 0x1f0   : > { %v2204_v20 = vpop.eup %2203  ;;  %v1113_v21 = vadd.f32 1.0, %v2202_v17  ;;  %v1727_v22 = vmul.f32 -1.442695, %v920_v15  ;;  %v1976_v23 = vpop.f32.mrb[32].mxu1 }
 0x1f1   : > { %v2206_v24 = vpop.eup %2205  ;;  %2223 = vrcp.f32 %v1110_v18  ;;  %v935_v25 = vadd.f32 %v1976_v23, %v2660_v16  ;;  %v929_v26 = vpop.f32.mrb[33].mxu1 }
 0x1f2   : > { %v2208_v27 = vpop.eup %2207  ;;  %2225 = vrcp.f32 %v1113_v21  ;;  %v930_v28 = vadd.f32 %v2660_v16, %v929_v26  ;;  %2009 = vmatprep.mubr.msk.f32.mxu0 %vm686_vm1, %v2206_v24 }
 0x1f3   : > { %v2210_v29 = vpop.eup %2209  ;;  %v1112_v30 = vadd.f32 1.0, %v2208_v27  ;;  %2227 = vpow2.f32 %v1728_v19  ;;  %v1730_v31 = vmul.f32 -1.442695, %v935_v25  ;;  %2010 = vmatmul.mubr.msk.f32.gmra.mrb[18].mxu0 %vm686_vm1, %v2204_v20 }
 0x1f4   : > { %v2212_v32 = vpop.eup %2211  ;;  %v1115_v33 = vadd.f32 1.0, %v2210_v29  ;;  %2229 = vpow2.f32 %v1727_v22  ;;  %v1729_v34 = vmul.f32 -1.442695, %v930_v28  ;;  %v1979_v35 = vpop.f32.mrb[34].mxu1 }
 0x1f5   : > { %v2214_v36 = vpop.eup %2213  ;;  %2231 = vrcp.f32 %v1112_v30  ;;  %v945_v37 = vadd.f32 %v1979_v35, %v2660_v16  ;;  %v939_v38 = vpop.f32.mrb[35].mxu1 }
 0x1f6   : > { %v2216_v39 = vpop.eup %2215  ;;  %2233 = vrcp.f32 %v1115_v33  ;;  %v940_v40 = vadd.f32 %v2660_v16, %v939_v38  ;;  %2012 = vmatprep.mubr.msk.f32.mxu0 %vm686_vm1, %v2214_v36 }
 0x1f7   : > { %v2218_v41 = vpop.eup %2217  ;;  %v1114_v42 = vadd.f32 1.0, %v2216_v39  ;;  %2235 = vpow2.f32 %v1730_v31  ;;  %v1732_v43 = vmul.f32 -1.442695, %v945_v37  ;;  %2013 = vmatmul.mubr.msk.f32.gmra.mrb[20].mxu0 %vm686_vm1, %v2212_v32 }
 0x1f8   : > { %v1117_v45 = vadd.f32 1.0, %v2218_v41  ;;  %2237 = vpow2.f32 %v1729_v34  ;;  %v1982_v46 = vpop.f32.mrb[36].mxu1  ;;  %v2220_v47 = vpop.eup %2219  ;;  %v1731_v48 = vmul.f32 -1.442695, %v940_v40 }
 0x1f9   : > { %2239 = vrcp.f32 %v1114_v42  ;;  %v955_v49 = vadd.f32 %v1982_v46, %v2660_v16  ;;  %v949_v50 = vpop.f32.mrb[37].mxu1  ;;  %v2222_v51 = vpop.eup %2221  ;;  %v1116_v52 = vadd.f32 1.0, %v2220_v47 }
 0x1fa   : > { %2241 = vrcp.f32 %v1117_v45  ;;  %v950_v53 = vadd.f32 %v2660_v16, %v949_v50 }
 0x1fb   : > { %v2224_v54 = vpop.eup %2223  ;;  %2243 = vpow2.f32 %v1732_v43  ;;  %v1734_v55 = vmul.f32 -1.442695, %v955_v49 }
 0x1fc   : > { %v2226_v56 = vpop.eup %2225  ;;  %2245 = vrcp.f32 %v1116_v52  ;;  %v1733_v57 = vmul.f32 -1.442695, %v950_v53  ;;  %2015 = vmatprep.mubr.msk.f32.mxu0 %vm686_vm1, %v2224_v54  ;;  %v1985_v58 = vpop.f32.mrb[38].mxu1 }
 0x1fd   : > { %v2228_v59 = vpop.eup %2227  ;;  %2247 = vpow2.f32 %v1731_v48  ;;  %2016 = vmatmul.mubr.msk.f32.gmra.mrb[22].mxu0 %vm686_vm1, %v2222_v51  ;;  %v965_v60 = vadd.f32 %v1985_v58, %v2660_v16  ;;  %v959_v61 = vpop.f32.mrb[39].mxu1 }
 0x1fe   : > { %v2230_v62 = vpop.eup %2229  ;;  %v1119_v63 = vadd.f32 1.0, %v2228_v59  ;;  %2249 = vpow2.f32 %v1734_v55  ;;  %v960_v0 = vadd.f32 %v2660_v16, %v959_v61 }
 0x1ff   : > { %v2232_v1 = vpop.eup %2231  ;;  %v1118_v2 = vadd.f32 1.0, %v2230_v62  ;;  %2251 = vpow2.f32 %v1733_v57  ;;  %v1736_v3 = vmul.f32 -1.442695, %v965_v60 }
 0x200   : > { %v2234_v4 = vpop.eup %2233  ;;  %2253 = vrcp.f32 %v1119_v63  ;;  %v1735_v5 = vmul.f32 -1.442695, %v960_v0  ;;  %2018 = vmatprep.mubr.msk.f32.mxu0 %vm686_vm1, %v2232_v1  ;;  %v1988_v6 = vpop.f32.mrb[40].mxu1 }
 0x201   : > { %v2236_v7 = vpop.eup %2235  ;;  %2255 = vrcp.f32 %v1118_v2  ;;  %2019 = vmatmul.mubr.msk.f32.gmra.mrb[24].mxu0 %vm686_vm1, %v2226_v56  ;;  %v975_v8 = vadd.f32 %v1988_v6, %v2660_v16  ;;  %v969_v9 = vpop.f32.mrb[41].mxu1 }
 0x202   : > { %v2238_v10 = vpop.eup %2237  ;;  %v1121_v11 = vadd.f32 1.0, %v2236_v7  ;;  %2257 = vpow2.f32 %v1736_v3  ;;  %v970_v12 = vadd.f32 %v2660_v16, %v969_v9 }
 0x203   : > { %v2240_v44 = vpop.eup %2239  ;;  %v1120_v13 = vadd.f32 1.0, %v2238_v10  ;;  %2259 = vpow2.f32 %v1735_v5  ;;  %v1738_v14 = vmul.f32 -1.442695, %v975_v8 }
 0x204   : > { %v2242_v15 = vpop.eup %2241  ;;  %2261 = vrcp.f32 %v1121_v11  ;;  %v1737_v17 = vmul.f32 -1.442695, %v970_v12  ;;  %2021 = vmatprep.mubr.msk.f32.mxu0 %vm686_vm1, %v2240_v44  ;;  %v1991_v18 = vpop.f32.mrb[42].mxu1 }
 0x205   : > { %v2244_v19 = vpop.eup %2243  ;;  %2263 = vrcp.f32 %v1120_v13  ;;  %2022 = vmatmul.mubr.msk.f32.gmra.mrb[26].mxu0 %vm686_vm1, %v2234_v4  ;;  %v985_v20 = vadd.f32 %v1991_v18, %v2660_v16  ;;  %v979_v21 = vpop.f32.mrb[43].mxu1 }
 0x206   : > { %v2246_v22 = vpop.eup %2245  ;;  %2265 = vpow2.f32 %v1738_v14  ;;  %v980_v23 = vadd.f32 %v2660_v16, %v979_v21  ;;  %v1123_v25 = vadd.f32 1.0, %v2244_v19  ;;  %v2732_v19 = vld [vmem:[%s2858_s6] ss:$0 sm:$0xff] }
 0x207   : > { %v2248_v24 = vpop.eup %2247  ;;  %2267 = vpow2.f32 %v1737_v17  ;;  %v1740_v26 = vmul.f32 -1.442695, %v985_v20  ;;  %2024 = vmatprep.mubr.msk.f32.mxu0 %vm686_vm1, %v2246_v22 }
 0x208   : > { %v2250_v27 = vpop.eup %2249  ;;  %v1122_v28 = vadd.f32 1.0, %v2248_v24  ;;  %v1994_v29 = vpop.f32.mrb[44].mxu1  ;;  %v1739_v31 = vmul.f32 -1.442695, %v980_v23 }
 0x209   : > { %v2252_v30 = vpop.eup %2251  ;;  %2269 = vpow2.f32 %v1740_v26  ;;  %2025 = vmatmul.mubr.msk.f32.gmra.mrb[28].mxu0 %vm686_vm1, %v2242_v15  ;;  %v995_v32 = vadd.f32 %v1994_v29, %v2660_v16  ;;  %v989_v33 = vpop.f32.mrb[45].mxu1  ;;  %v1125_v38 = vadd.f32 1.0, %v2250_v27 }
 0x20a   : > { %v2254_v34 = vpop.eup %2253  ;;  %2271 = vrcp.f32 %v1122_v28  ;;  %v1124_v35 = vadd.f32 1.0, %v2252_v30  ;;  %v990_v36 = vadd.f32 %v2660_v16, %v989_v33 }
 0x20b   : > { %v2256_v37 = vpop.eup %2255  ;;  %2273 = vrcp.f32 %v1123_v25  ;;  %v1742_v39 = vmul.f32 -1.442695, %v995_v32 }
 0x20c   : > { %v2258_v40 = vpop.eup %2257  ;;  %2275 = vrcp.f32 %v1124_v35  ;;  %2027 = vmatprep.mubr.msk.f32.mxu0 %vm686_vm1, %v2256_v37  ;;  %v1997_v41 = vpop.f32.mrb[46].mxu1  ;;  %v1741_v43 = vmul.f32 -1.442695, %v990_v36 }
 0x20d   : > { %v2260_v42 = vpop.eup %2259  ;;  %2277 = vpow2.f32 %v1739_v31  ;;  %2028 = vmatmul.mubr.msk.f32.gmra.mrb[30].mxu0 %vm686_vm1, %v2254_v34  ;;  %v1005_v45 = vadd.f32 %v1997_v41, %v2660_v16  ;;  %v999_v46 = vpop.f32.mrb[47].mxu1  ;;  %v1127_v51 = vadd.f32 1.0, %v2258_v40 }
 0x20e   : > { %v2262_v47 = vpop.eup %2261  ;;  %v1126_v48 = vadd.f32 1.0, %v2260_v42  ;;  %2279 = vpow2.f32 %v1742_v39  ;;  %v1000_v49 = vadd.f32 %v2660_v16, %v999_v46 }
 0x20f   : > { %v2264_v50 = vpop.eup %2263  ;;  %2281 = vrcp.f32 %v1125_v38  ;;  %v1744_v52 = vmul.f32 -1.442695, %v1005_v45 }
 0x210   : > { %v2266_v53 = vpop.eup %2265  ;;  %2283 = vrcp.f32 %v1126_v48  ;;  %2030 = vmatprep.mubr.msk.f32.mxu0 %vm686_vm1, %v2264_v50  ;;  %v1743_v55 = vmul.f32 -1.442695, %v1000_v49 }
 0x211   : > { %v2268_v54 = vpop.eup %2267  ;;  %2285 = vpow2.f32 %v1741_v43  ;;  %2031 = vmatmul.mubr.msk.f32.gmra.mrb[32].mxu0 %vm686_vm1, %v2262_v47  ;;  %v1129_v58 = vadd.f32 1.0, %v2266_v53 }
 0x212   : > { %v1128_v56 = vadd.f32 1.0, %v2268_v54  ;;  %2287 = vpow2.f32 %v1744_v52 }
 0x213   : > { %v2270_v57 = vpop.eup %2269  ;;  %2289 = vrcp.f32 %v1127_v51 }
 0x214   : > { %v2272_v59 = vpop.eup %2271  ;;  %2291 = vrcp.f32 %v1128_v56  ;;  %v1131_v62 = vadd.f32 1.0, %v2270_v57 }
 0x215   : > { %v2274_v16 = vpop.eup %2273  ;;  %2293 = vpow2.f32 %v1743_v55  ;;  %2033 = vmatprep.mubr.msk.f32.mxu0 %vm686_vm1, %v2272_v59 }
 0x216   : > { %v2276_v60 = vpop.eup %2275  ;;  %2034 = vmatmul.mubr.msk.f32.gmra.mrb[34].mxu0 %vm686_vm1, %v2274_v16  ;;  %2295 = vrcp.f32 %v1129_v58 }
 0x217   : > { %v2278_v61 = vpop.eup %2277  ;;  %2036 = vmatprep.mubr.msk.f32.mxu0 %vm686_vm1, %v2276_v60 }
 0x218   : > { %v2280_v63 = vpop.eup %2279  ;;  %v1130_v0 = vadd.f32 1.0, %v2278_v61 }
 0x219   : > { %v2282_v1 = vpop.eup %2281  ;;  %v1133_v4 = vadd.f32 1.0, %v2280_v63 }
 0x21a   : > { %v2284_v2 = vpop.eup %2283  ;;  %2297 = vrcp.f32 %v1130_v0  ;;  %2037 = vmatmul.mubr.msk.f32.gmra.mrb[36].mxu0 %vm686_vm1, %v2282_v1 }
 0x21b   : > { %v2286_v3 = vpop.eup %2285  ;;  %2299 = vrcp.f32 %v1131_v62  ;;  %2039 = vmatprep.mubr.msk.f32.mxu0 %vm686_vm1, %v2284_v2 }
 0x21c   : > { %v2288_v5 = vpop.eup %2287  ;;  %v1132_v6 = vadd.f32 1.0, %v2286_v3 }
 0x21d   : > { %v2290_v7 = vpop.eup %2289  ;;  %v1135_v10 = vadd.f32 1.0, %v2288_v5 }
 0x21e   : > { %v2292_v8 = vpop.eup %2291  ;;  %2301 = vrcp.f32 %v1132_v6  ;;  %2040 = vmatmul.mubr.msk.f32.gmra.mrb[38].mxu0 %vm686_vm1, %v2290_v7 }
 0x21f   : > { %v2294_v9 = vpop.eup %2293  ;;  %2303 = vrcp.f32 %v1133_v4  ;;  %2042 = vmatprep.mubr.msk.f32.mxu0 %vm686_vm1, %v2292_v8 }
 0x220   : > { %v1134_v11 = vadd.f32 1.0, %v2294_v9  ;;  %v2296_v12 = vpop.eup %2295 }
 0x222   : > { %2305 = vrcp.f32 %v1134_v11  ;;  %2043 = vmatmul.mubr.msk.f32.gmra.mrb[40].mxu0 %vm686_vm1, %v2296_v12 }
 0x223   : > { %2307 = vrcp.f32 %v1135_v10 }
 0x224   : > { %v2298_v44 = vpop.eup %2297 }
 0x225   : > { %v2300_v13 = vpop.eup %2299  ;;  %2045 = vmatprep.mubr.msk.f32.mxu0 %vm686_vm1, %v2298_v44 }
 0x226   : > { %2046 = vmatmul.mubr.msk.f32.gmra.mrb[42].mxu0 %vm686_vm1, %v2300_v13 }
 0x228   : > { %v2302_v14 = vpop.eup %2301 }
 0x229   : > { %v2304_v15 = vpop.eup %2303  ;;  %2048 = vmatprep.mubr.msk.f32.mxu0 %vm686_vm1, %v2302_v14 }
 0x22a   : > { %2049 = vmatmul.mubr.msk.f32.gmra.mrb[44].mxu0 %vm686_vm1, %v2304_v15 }
 0x22c   : > { %v2306_v17 = vpop.eup %2305 }
 0x22d   : > { %v2308_v18 = vpop.eup %2307  ;;  %2051 = vmatprep.mubr.msk.f32.mxu0 %vm686_vm1, %v2306_v17 }
 0x22e   : > { %2052 = vmatmul.mubr.msk.f32.gmra.mrb[46].mxu0 %vm686_vm1, %v2308_v18 }
 0x2c2   : > { %v2008_v20 = vpop.f32.mrb[16].mxu0 }
 0x2c3   : > { %v1379_v21 = vadd.f32 %v2008_v20, %v2732_v19  ;;  %v1373_v22 = vpop.f32.mrb[17].mxu0 }
 0x2c4   : > { %v1374_v23 = vadd.f32 %v2732_v19, %v1373_v22 }
 0x2c5   : > { %1533 = vst [vmem:[%s2736_s18 + $0x8] sm:$0xff] %v1379_v21 }
 0x2c6   : > { %1532 = vst [vmem:[%s2736_s18] sm:$0xff] %v1374_v23  ;;  %v2011_v24 = vpop.f32.mrb[18].mxu0 }
 0x2c7   : > { %v1389_v25 = vadd.f32 %v2011_v24, %v2732_v19  ;;  %v1383_v26 = vpop.f32.mrb[19].mxu0 }
 0x2c8   : > { %v1384_v27 = vadd.f32 %v2732_v19, %v1383_v26 }
 0x2c9   : > { %1535 = vst [vmem:[%s2736_s18 + $0x18] sm:$0xff] %v1389_v25 }
 0x2ca   : > { %1534 = vst [vmem:[%s2736_s18 + $0x10] sm:$0xff] %v1384_v27  ;;  %v2014_v28 = vpop.f32.mrb[20].mxu0 }
 0x2cb   : > { %v1399_v29 = vadd.f32 %v2014_v28, %v2732_v19  ;;  %v1393_v30 = vpop.f32.mrb[21].mxu0 }
 0x2cc   : > { %v1394_v31 = vadd.f32 %v2732_v19, %v1393_v30 }
 0x2cd   : > { %1537 = vst [vmem:[%s2736_s18 + $0x28] sm:$0xff] %v1399_v29 }
 0x2ce   : > { %1536 = vst [vmem:[%s2736_s18 + $0x20] sm:$0xff] %v1394_v31 }
 0x2d0   : > { %v2017_v32 = vpop.f32.mrb[22].mxu0 }
 0x2d1   : > { %v1409_v33 = vadd.f32 %v2017_v32, %v2732_v19  ;;  %v1403_v34 = vpop.f32.mrb[23].mxu0 }
 0x2d2   : > { %v1404_v35 = vadd.f32 %v2732_v19, %v1403_v34 }
 0x2d3   : > { %1539 = vst [vmem:[%s2736_s18 + $0x38] sm:$0xff] %v1409_v33 }
 0x2d4   : > { %1538 = vst [vmem:[%s2736_s18 + $0x30] sm:$0xff] %v1404_v35  ;;  %v2020_v36 = vpop.f32.mrb[24].mxu0 }
 0x2d5   : > { %v1419_v37 = vadd.f32 %v2020_v36, %v2732_v19  ;;  %v1413_v38 = vpop.f32.mrb[25].mxu0 }
 0x2d6   : > { %v1414_v39 = vadd.f32 %v2732_v19, %v1413_v38 }
 0x2d7   : > { %1541 = vst [vmem:[%s2736_s18 + $0x48] sm:$0xff] %v1419_v37 }
 0x2d8   : > { %1540 = vst [vmem:[%s2736_s18 + $0x40] sm:$0xff] %v1414_v39  ;;  %v2023_v40 = vpop.f32.mrb[26].mxu0 }
 0x2d9   : > { %v1429_v41 = vadd.f32 %v2023_v40, %v2732_v19  ;;  %v1423_v42 = vpop.f32.mrb[27].mxu0 }
 0x2da   : > { %v1424_v43 = vadd.f32 %v2732_v19, %v1423_v42 }
 0x2db   : > { %1543 = vst [vmem:[%s2736_s18 + $0x58] sm:$0xff] %v1429_v41 }
 0x2dc   : > { %1542 = vst [vmem:[%s2736_s18 + $0x50] sm:$0xff] %v1424_v43  ;;  %v2026_v45 = vpop.f32.mrb[28].mxu0 }
 0x2dd   : > { %v1439_v46 = vadd.f32 %v2026_v45, %v2732_v19  ;;  %v1433_v47 = vpop.f32.mrb[29].mxu0 }
 0x2de   : > { %v1434_v48 = vadd.f32 %v2732_v19, %v1433_v47 }
 0x2df   : > { %1545 = vst [vmem:[%s2736_s18 + $0x68] sm:$0xff] %v1439_v46 }
 0x2e0   : > { %1544 = vst [vmem:[%s2736_s18 + $0x60] sm:$0xff] %v1434_v48  ;;  %v2029_v49 = vpop.f32.mrb[30].mxu0 }
 0x2e1   : > { %v1449_v50 = vadd.f32 %v2029_v49, %v2732_v19  ;;  %v1443_v51 = vpop.f32.mrb[31].mxu0 }
 0x2e2   : > { %v1444_v52 = vadd.f32 %v2732_v19, %v1443_v51 }
 0x2e3   : > { %1547 = vst [vmem:[%s2736_s18 + $0x78] sm:$0xff] %v1449_v50 }
 0x2e4   : > { %1546 = vst [vmem:[%s2736_s18 + $0x70] sm:$0xff] %v1444_v52  ;;  %v2032_v53 = vpop.f32.mrb[32].mxu0 }
 0x2e5   : > { %v1459_v54 = vadd.f32 %v2032_v53, %v2732_v19  ;;  %v1453_v55 = vpop.f32.mrb[33].mxu0 }
 0x2e6   : > { %v1454_v56 = vadd.f32 %v2732_v19, %v1453_v55 }
 0x2e7   : > { %1549 = vst [vmem:[%s2736_s18 + $0x88] sm:$0xff] %v1459_v54 }
 0x2e8   : > { %1548 = vst [vmem:[%s2736_s18 + $0x80] sm:$0xff] %v1454_v56 }
 0x2e9   : > { %v2035_v57 = vpop.f32.mrb[34].mxu0 }
 0x2ea   : > { %v1469_v58 = vadd.f32 %v2035_v57, %v2732_v19  ;;  %v1463_v59 = vpop.f32.mrb[35].mxu0 }
 0x2eb   : > { %v1464_v16 = vadd.f32 %v2732_v19, %v1463_v59 }
 0x2ec   : > { %1551 = vst [vmem:[%s2736_s18 + $0x98] sm:$0xff] %v1469_v58 }
 0x2ed   : > { %1550 = vst [vmem:[%s2736_s18 + $0x90] sm:$0xff] %v1464_v16  ;;  %v2038_v60 = vpop.f32.mrb[36].mxu0 }
 0x2ee   : > { %v1479_v61 = vadd.f32 %v2038_v60, %v2732_v19  ;;  %v1473_v62 = vpop.f32.mrb[37].mxu0 }
 0x2ef   : > { %v1474_v63 = vadd.f32 %v2732_v19, %v1473_v62 }
 0x2f0   : > { %1553 = vst [vmem:[%s2736_s18 + $0xa8] sm:$0xff] %v1479_v61 }
 0x2f1   : > { %1552 = vst [vmem:[%s2736_s18 + $0xa0] sm:$0xff] %v1474_v63  ;;  %v2041_v0 = vpop.f32.mrb[38].mxu0 }
 0x2f2   : > { %v1489_v1 = vadd.f32 %v2041_v0, %v2732_v19  ;;  %v1483_v2 = vpop.f32.mrb[39].mxu0 }
 0x2f3   : > { %v1484_v3 = vadd.f32 %v2732_v19, %v1483_v2 }
 0x2f4   : > { %1555 = vst [vmem:[%s2736_s18 + $0xb8] sm:$0xff] %v1489_v1 }
 0x2f5   : > { %1554 = vst [vmem:[%s2736_s18 + $0xb0] sm:$0xff] %v1484_v3  ;;  %v2044_v4 = vpop.f32.mrb[40].mxu0 }
 0x2f6   : > { %v1499_v5 = vadd.f32 %v2044_v4, %v2732_v19  ;;  %v1493_v6 = vpop.f32.mrb[41].mxu0 }
 0x2f7   : > { %v1494_v7 = vadd.f32 %v2732_v19, %v1493_v6 }
 0x2f8   : > { %1557 = vst [vmem:[%s2736_s18 + $0xc8] sm:$0xff] %v1499_v5 }
 0x2f9   : > { %1556 = vst [vmem:[%s2736_s18 + $0xc0] sm:$0xff] %v1494_v7  ;;  %v2047_v8 = vpop.f32.mrb[42].mxu0 }
 0x2fa   : > { %v1509_v9 = vadd.f32 %v2047_v8, %v2732_v19  ;;  %v1503_v10 = vpop.f32.mrb[43].mxu0 }
 0x2fb   : > { %v1504_v11 = vadd.f32 %v2732_v19, %v1503_v10 }
 0x2fc   : > { %1559 = vst [vmem:[%s2736_s18 + $0xd8] sm:$0xff] %v1509_v9 }
 0x2fd   : > { %1558 = vst [vmem:[%s2736_s18 + $0xd0] sm:$0xff] %v1504_v11  ;;  %v2050_v12 = vpop.f32.mrb[44].mxu0 }
 0x2fe   : > { %v1519_v44 = vadd.f32 %v2050_v12, %v2732_v19  ;;  %v1513_v13 = vpop.f32.mrb[45].mxu0 }
 0x2ff   : > { %v1514_v14 = vadd.f32 %v2732_v19, %v1513_v13 }
 0x300   : > { %1561 = vst [vmem:[%s2736_s18 + $0xe8] sm:$0xff] %v1519_v44 }
 0x301   : > { %1560 = vst [vmem:[%s2736_s18 + $0xe0] sm:$0xff] %v1514_v14  ;;  %v2053_v15 = vpop.f32.mrb[46].mxu0 }
 0x302   : > { %v1529_v17 = vadd.f32 %v2053_v15, %v2732_v19  ;;  %v1523_v18 = vpop.f32.mrb[47].mxu0 }
 0x303   : > { %v1524_v20 = vadd.f32 %v2732_v19, %v1523_v18 }
 0x304   : > { %1563 = vst [vmem:[%s2736_s18 + $0xf8] sm:$0xff] %v1529_v17 }
 0x305   : > { %1562 = vst [vmem:[%s2736_s18 + $0xf0] sm:$0xff] %v1524_v20 }
 0x306   : > { %2322 = shalt.err (!%p2319_p3)
}
 0x307   : > { %s2323_s14 = scalar_lea.hbm %s2802_s23, 4096  ;;  %s2327_s17 = scalar_lea.hbm %s2859_s7, 8192 }
 0x308   : > { %p2324_p4 = scmp.ne.s32.totalorder %s2802_s23, %s2323_s14  ;;  %p2328_p9 = scmp.lt.u32.totalorder %s2802_s23, %s2859_s7 }
 0x309   : > { %p2329_p10 = scmp.lt.u32.totalorder %s2327_s17, %s2323_s14  ;;  %p2331_p12 = scmp.lt.u32.totalorder %s2323_s14, %s2802_s23 }
 0x30a   : > { %p2325_p7 = pnand %p2324_p4, %p2454_p5 }
 0x30b   : > { %p2330_p11 = por %p2329_p10, %p2328_p9 }
 0x30c   : > { %p2326_p8 = pneg %p2325_p7 }
 0x30d   : > { %p2332_p13 = por %p2331_p12, %p2330_p11 }
 0x30f   : > { %p2333_p0 = pnand %p2332_p13, %p2326_p8 }
 0x311   : > { %2336 = shalt.err (!%p2333_p0)
}
 0x312   : > { %s2374_s21 = smov 128   ;;  %s2375_s22 = smov 8  }
 0x313   : > { %2076 = dma.vmem_to_hbm [thread:$0]  (%p2454_p5), %s2804_s20, 4096, %s2802_s23, %s2811_s28, %s2374_s21, %s2374_s21, %s2375_s22  }
 0x314 PF: > { %p2082_p1 = scmp.ge.s32.totalorder %s2371_s27, 2  ;;  %s1593_s29 = sand.u32 1, %s2359_s24  }
 0x315   : > { %s1594_s8 = scalar_lea.sflag [#allocation3], %s1593_s29 }
 0x316   : > { %p2079_p2 = pnand %p2082_p1, %p2458_p6 }
 0x318   : > { %2354 = dma.done.wait (!%p2079_p2), %s1594_s8, 4096  }
 0x319   : > { %2356 = vsyncadd (!%p2079_p2), %s1594_s8, 4294963200  ;;  %p17_p3 = scmp.ge.s32.totalorder %s2441_s30, 4   ;;  %s2862_s24 = smov %s2363_s25 }
 0x31a   : > { %s2863_s25 = smov %s2367_s26  ;;  %s2864_s26 = smov %s2452_s10 }
 0x31b   : > { %s2865_s27 = smov %s2441_s30  ;;  %19 = sbr.rel (!%p17_p3) target bundleno = 3 (0x3), region = 83 }
 0x322   :  { %1599 = vsyncpa [#allocation3], 1 }
 0x323   :  { %1601 = vsyncpa [#allocation3 + $0x1], 1 }

</bundles_post_ra>
